<compile_context>
chip_gen: v6e
topology: v6e:2x2x1
jax: 0.10.0
libtpu: 0.0.40
codegen_flags: <defaults>
</compile_context>

<pallas_src>
import jax
import jax.numpy as jnp
from jax.experimental import pallas as pl
from jax.experimental.pallas import tpu as pltpu


def _swish_kernel(x_ref, o_ref):
    x = x_ref[...]
    # bf16 stays bf16 (v6e/v7x bf16 VPU+EUP); everything else computes in f32.
    compute_dtype = jnp.bfloat16 if x.dtype == jnp.bfloat16 else jnp.float32
    xf = x.astype(compute_dtype)
    # sigmoid(x) = 0.5 * (tanh(x/2) + 1): tanh maps to the EUP slot, leaving
    # only a couple of mul/adds on the VALU (hidden under DMA for this
    # memory-bound op).
    sig = 0.5 * (jnp.tanh(0.5 * xf) + 1.0)
    o_ref[...] = (xf * sig).astype(o_ref.dtype)


def _block_and_vmem_params():
    """Generation-gated (block_bytes, vmem_limit_bytes)."""
    try:
        vmem_cap = pltpu.get_tpu_info().vmem_capacity_bytes
    except Exception:  # pragma: no cover - conservative default
        vmem_cap = 64 * 1024 * 1024
    if vmem_cap >= 128 * 1024 * 1024:
        # v5e / v6e: 128 MiB physical VMEM.  4 MiB blocks, double-buffered
        # in+out = 16 MiB, well under the raised 48 MiB scoped limit.
        return 4 * 1024 * 1024, 48 * 1024 * 1024
    # v7x: 64 MiB physical VMEM per TC but ~3.2 TB/s HBM -> larger blocks to
    # amortize per-step overhead; 2 bufs x (in+out) x 6 MiB = 24 MiB <= 32 MiB.
    return 6 * 1024 * 1024, 32 * 1024 * 1024


def swish(x, *, donate=False):
    """Elementwise Swish / SiLU: x * sigmoid(x).  Floating dtypes only."""
    if not jnp.issubdtype(x.dtype, jnp.floating):
        raise TypeError(f"swish expects a floating dtype, got {x.dtype}")

    orig_shape = x.shape
    dtype = x.dtype
    n = x.size
    if n == 0:
        return x

    itemsize = jnp.dtype(dtype).itemsize
    block_bytes, vmem_limit = _block_and_vmem_params()
    compiler_params = pltpu.CompilerParams(
        dimension_semantics=("parallel",),   # v7x: shard tiles over its 2 TCs
        vmem_limit_bytes=vmem_limit,
    )
    cost = pl.CostEstimate(
        flops=4 * n, transcendentals=n, bytes_accessed=2 * n * itemsize)
    io_alias = {0: 0} if donate else {}

    # Widest lane (last) dim (multiple of 128, up to 2048) dividing the flat
    # size -> zero-copy reshape, lane-dense unmasked stores.
    lanes = next((c for c in (2048, 1024, 512, 256, 128) if n % c == 0), None)

    if lanes is not None:
        sublane = max(8, 32 // itemsize)     # 8 f32 / 16 bf16 / 32 int8-width
        rows = n // lanes
        x2d = jnp.ravel(x).reshape(rows, lanes)   # free metadata reshape

        tile_rows = max(sublane, block_bytes // (lanes * itemsize))
        tile_rows = (tile_rows // sublane) * sublane
        if tile_rows >= rows:
            if rows >= 2 * sublane:
                # Keep >=2 grid steps so both v7x TensorCores get work and
                # there is DMA/compute overlap even for medium activations.
                half = pl.cdiv(rows, 2)
                tile_rows = ((half + sublane - 1) // sublane) * sublane
            else:
                tile_rows = rows             # single block spans full rows dim
        grid = (pl.cdiv(rows, tile_rows),)   # ragged last row-block is masked

        out2d = pl.pallas_call(
            _swish_kernel,
            out_shape=jax.ShapeDtypeStruct((rows, lanes), dtype),
            grid_spec=pltpu.PrefetchScalarGridSpec(
                num_scalar_prefetch=0,
                grid=grid,
                in_specs=[pl.BlockSpec((tile_rows, lanes), lambda i: (i, 0))],
                out_specs=pl.BlockSpec((tile_rows, lanes), lambda i: (i, 0)),
            ),
            compiler_params=compiler_params,
            cost_estimate=cost,
            input_output_aliases=io_alias,
        )(x2d)
        return out2d.reshape(orig_shape)

    # Rare fallback (flat size not a multiple of 128): run directly on the
    # flat 1-D view with a ragged last block (Pallas masks the tail store).
    # No pad / slice round trips -> no extra full-tensor HBM copies.
    x1d = jnp.ravel(x)
    block = max(1024, (block_bytes // itemsize) // 1024 * 1024)
    if block >= n:
        block = n                            # one full-extent block
    grid = (pl.cdiv(n, block),)

    out1d = pl.pallas_call(
        _swish_kernel,
        out_shape=jax.ShapeDtypeStruct((n,), dtype),
        grid_spec=pltpu.PrefetchScalarGridSpec(
            num_scalar_prefetch=0,
            grid=grid,
            in_specs=[pl.BlockSpec((block,), lambda i: (i,))],
            out_specs=pl.BlockSpec((block,), lambda i: (i,)),
        ),
        compiler_params=compiler_params,
        cost_estimate=cost,
        input_output_aliases=io_alias,
    )(x1d)
    return out1d.reshape(orig_shape)


if __name__ == "__main__":
    key = jax.random.PRNGKey(0)

    # Main path: small NCHW input consistent with EfficientNet usage (f32).
    x = jax.random.normal(key, (2, 4, 16, 16), dtype=jnp.float32)
    out = jax.block_until_ready(swish(x))
    ref = x * jax.nn.sigmoid(x)
    assert out.shape == x.shape and out.dtype == x.dtype
    assert jnp.max(jnp.abs(out - ref)) < 1e-5

    # bf16-native compute path.
    xb = x.astype(jnp.bfloat16)
    outb = jax.block_until_ready(swish(xb))
    refb = (xb.astype(jnp.float32) * jax.nn.sigmoid(xb.astype(jnp.float32)))
    assert outb.shape == xb.shape and outb.dtype == jnp.bfloat16
    assert jnp.max(jnp.abs(outb.astype(jnp.float32) - refb)) < 5e-2

    # Fallback path (flat size not a multiple of 128).
    xo = jax.random.normal(jax.random.PRNGKey(1), (3, 5, 7), dtype=jnp.float32)
    outo = jax.block_until_ready(swish(xo))
    refo = xo * jax.nn.sigmoid(xo)
    assert outo.shape == xo.shape and outo.dtype == xo.dtype
    assert jnp.max(jnp.abs(outo - refo)) < 1e-5

    print("KERNEL_OK")
</pallas_src>

<mosaic_0001>
module attributes {stable_mosaic.version = 11 : i64} {
  func.func @_swish_kernel(%arg0: i32, %arg1: memref<1x2048xf32, #tpu.memory_space<vmem>>, %arg2: memref<1x2048xf32, #tpu.memory_space<vmem>>) attributes {dimension_semantics = [#tpu.dimension_semantics<parallel>], iteration_bounds = array<i64: 1>, scalar_prefetch = 0 : i64, scratch_operands = 0 : i64, tpu.core_type = #tpu.core_type<tc>, window_params = [{transform_indices = @transform_0, window_bounds = array<i64: 1, 2048>}, {transform_indices = @transform_1, window_bounds = array<i64: 1, 2048>}]} {
    %c0 = arith.constant 0 : index
    %c0_0 = arith.constant 0 : index
    %0 = vector.load %arg1[%c0, %c0_0] : memref<1x2048xf32, #tpu.memory_space<vmem>>, vector<1x2048xf32>
    %cst = arith.constant 5.000000e-01 : f32
    %1 = vector.broadcast %cst : f32 to vector<1x2048xf32>
    %2 = arith.mulf %1, %0 : vector<1x2048xf32>
    %3 = math.tanh %2 : vector<1x2048xf32>
    %cst_1 = arith.constant 1.000000e+00 : f32
    %4 = vector.broadcast %cst_1 : f32 to vector<1x2048xf32>
    %5 = arith.addf %3, %4 : vector<1x2048xf32>
    %cst_2 = arith.constant 5.000000e-01 : f32
    %6 = vector.broadcast %cst_2 : f32 to vector<1x2048xf32>
    %7 = arith.mulf %6, %5 : vector<1x2048xf32>
    %8 = arith.mulf %0, %7 : vector<1x2048xf32>
    %c0_3 = arith.constant 0 : index
    %c0_4 = arith.constant 0 : index
    %9 = vector.load %arg2[%c0_3, %c0_4] : memref<1x2048xf32, #tpu.memory_space<vmem>>, vector<1x2048xf32>
    tpu.vector_store %arg2[%c0_3, %c0_4], %8 {strides = array<i32>} : memref<1x2048xf32, #tpu.memory_space<vmem>>, vector<1x2048xf32>,
    return
  }
  func.func @transform_0(%arg0: i32) -> (i32, i32) {
    %c0_i32 = arith.constant 0 : i32
    %c0_i32_0 = arith.constant 0 : i32
    return %arg0, %c0_i32 : i32, i32
  }
  func.func @transform_1(%arg0: i32) -> (i32, i32) {
    %c0_i32 = arith.constant 0 : i32
    %c0_i32_0 = arith.constant 0 : i32
    return %arg0, %c0_i32 : i32, i32
  }
}

</mosaic_0001>

<bundles_post_ra>
// kernel: tpu_custom_call.1
= control target key start
LH: loop header
LB: loop body
LE: loop exit
PB: predicated region body
PF: predicated region fallthrough
CT: control target
= control target key end

     0   :  { %6 = vsyncpa [#allocation3], 0  ;;  %s118_s0 = inlined_call_operand.hbm [shape: f32[1,2048], index: 0, kind: input, shape index: {}]   ;;  %s119_s1 = inlined_call_operand.hbm [shape: f32[1,2048], index: 1, kind: output, shape index: {}]  }
   0x1   :  { %7 = vsyncpa [#allocation4], 0  ;;  %s100_s6 = smov [#allocation2]  }
   0x2   :  { %s14_s7 = sshll.u32 %s100_s6, 4  ;;  %s15_s7 = int_to_ptr.vmem [resolvable:$true] %s14_s7 }
   0x3   :  { %s64_s8 = scalar_lea.vmem %s15_s7, 256  ;;  %p69_p1 = scmp.lt.s32.totalorder %s15_s7, %s15_s7 }
   0x4   :  { %p65_p0 = scmp.ne.s32.totalorder %s15_s7, %s64_s8  ;;  %p70_p2 = scmp.lt.s32.totalorder %s64_s8, %s64_s8 }
   0x6   :  { %p71_p3 = por %p70_p2, %p69_p1 }
   0x8   :  { %p72_p4 = pnand %p71_p3, %p65_p0 }
   0xa   :  { %75 = shalt.err (!%p72_p4)
}
   0xb   :  { %17 = dma.hbm_to_vmem [thread:$0]  %s118_s0, 256, %s15_s7, [#allocation3]  }
   0xc   :  { %96 = dma.done.wait [#allocation3], 256  }
   0xd   :  { %97 = vsyncadd [#allocation3], 4294967040  ;;  %v21_v0 = vld [vmem:[#allocation2] sm:$0xff]  ;;  %v22_v1 = vld [vmem:[#allocation2 + $0x8] sm:$0xff]  ;;  %s101_s11 = smov [#allocation5]  }
   0xe   :  { %v23_v2 = vmul.f32 0.5, %v21_v0  ;;  %v24_v3 = vmul.f32 0.5, %v22_v1  ;;  %s41_s12 = sshll.u32 %s101_s11, 4  ;;  %s42_s12 = int_to_ptr.vmem [resolvable:$true] %s41_s12 }
   0xf   :  { %s76_s0 = scalar_lea.vmem %s42_s12, 256  ;;  %p81_p6 = scmp.lt.s32.totalorder %s42_s12, %s42_s12 }
  0x10   :  { %52 = vtanh.f32 %v23_v2  ;;  %p77_p5 = scmp.ne.s32.totalorder %s42_s12, %s76_s0  ;;  %p82_p7 = scmp.lt.s32.totalorder %s76_s0, %s76_s0 }
  0x11   :  { %54 = vtanh.f32 %v24_v3 }
  0x12   :  { %p83_p8 = por %p82_p7, %p81_p6 }
  0x14   :  { %p84_p9 = pnand %p83_p8, %p77_p5 }
  0x1d   :  { %v53_v4 = vpop.eup %52 }
  0x1e   :  { %v55_v5 = vpop.eup %54  ;;  %v27_v6 = vadd.f32 1.0, %v53_v4 }
  0x1f   :  { %v28_v7 = vadd.f32 1.0, %v55_v5 }
  0x20   :  { %v29_v8 = vmul.f32 0.5, %v27_v6 }
  0x21   :  { %v30_v9 = vmul.f32 0.5, %v28_v7 }
  0x22   :  { %v31_v10 = vmul.f32 %v29_v8, %v21_v0 }
  0x23   :  { %v32_v11 = vmul.f32 %v30_v9, %v22_v1 }
  0x24   :  { %33 = vst [vmem:[#allocation5] sm:$0xff] %v31_v10 }
  0x25   :  { %34 = vst [vmem:[#allocation5 + $0x8] sm:$0xff] %v32_v11 }
  0x26   :  { %87 = shalt.err (!%p84_p9)
}
  0x27   :  { %44 = dma.vmem_to_hbm [thread:$0]  %s42_s12, 256, %s119_s1, [#allocation4]  }
  0x28   :  { %98 = dma.done.wait [#allocation4], 256  }
  0x29   :  { %99 = vsyncadd [#allocation4], 4294967040 }
  0x2a   :  { %48 = vsyncpa [#allocation3], 1 }
  0x2b   :  { %49 = vsyncpa [#allocation4], 1 }

</bundles_post_ra>
